<compile_context>
chip_gen: v5e
topology: v5e:2x2
jax: 0.10.0
libtpu: 0.0.40
codegen_flags: <defaults>
</compile_context>

<pallas_src>
import math

import jax
import jax.numpy as jnp
from jax.experimental import pallas as pl
from jax.experimental.pallas import tpu as pltpu


def make_positional_encoding(d_model: int, max_len: int = 5000) -> jax.Array:
    """Deterministic buffer setup (plain JAX glue) — mirrors __init__.

    Returns (max_len, 1, d_model) float32, matching the torch buffer layout.
    """
    position = jnp.arange(max_len, dtype=jnp.float32)[:, None]          # (max_len, 1)
    div_term = jnp.exp(
        jnp.arange(0, d_model, 2, dtype=jnp.float32) * (-math.log(10000.0) / d_model)
    )                                                                   # (ceil(d/2),)
    angles = position * div_term                                        # (max_len, ceil(d/2))
    pe = jnp.zeros((max_len, d_model), dtype=jnp.float32)
    pe = pe.at[:, 0::2].set(jnp.sin(angles))
    # Guard odd d_model: cos fills only floor(d/2) columns.
    pe = pe.at[:, 1::2].set(jnp.cos(angles[:, : d_model // 2]))
    return pe[:, None, :]                                               # (max_len, 1, d_model)


def _pe_add_kernel(x_ref, pe_ref, o_ref):
    # x_ref / o_ref: (tile_s, B*D) in x dtype; pe_ref: (tile_s, D) float32.
    pe = pe_ref[...]
    d = pe.shape[-1]
    b = x_ref.shape[-1] // d
    # Static (unrolled) loop over the folded batch axis.  Each slice is a
    # (tile_s, D) elementwise add; this broadcasts pe over batch in-kernel
    # (pe HBM traffic stays S*D) without materializing a (tile_s, B*D) f32
    # temporary in VMEM.
    for k in range(b):
        sl = slice(k * d, (k + 1) * d)
        o_ref[:, sl] = (x_ref[:, sl].astype(jnp.float32) + pe).astype(o_ref.dtype)


def _choose_tile_s(S: int, row_bytes: int, target_block_bytes: int = 4 << 20) -> int:
    """Pick a sequence tile: ~target_block_bytes per x block, multiple of 8
    (or the full S), and split so the parallel grid has >= 2 steps when the
    sequence is long enough (v7x megacore)."""
    tile = max(1, target_block_bytes // max(row_bytes, 1))
    if tile >= S:
        tile = S
        if S >= 16:
            half = -(-S // 2)            # ceil(S / 2)
            half = -(-half // 8) * 8     # round up to a multiple of 8
            if half < S:
                tile = half
    else:
        tile = max(8, (tile // 8) * 8)   # sublane-dense block height
    return tile


def positional_encoding_forward(x: jax.Array, pe: jax.Array) -> jax.Array:
    """x: (seq_len, batch, d_model); pe: (max_len, 1, d_model) float32."""
    S, B, D = x.shape
    assert pe.shape[0] >= S and pe.shape[-1] == D

    pe_slice = pe[:S, 0, :].astype(jnp.float32)      # (S, D) — stays f32 for the add
    x2 = x.reshape(S, B * D)                         # free reshape (contiguous fold)

    itemsize = x.dtype.itemsize
    row_bytes = B * D * itemsize
    tile_s = _choose_tile_s(S, row_bytes)
    grid = (pl.cdiv(S, tile_s),)
    # Trailing partial block (when tile_s does not divide S) is safe: Pallas
    # clips boundary-block writebacks and the op is purely elementwise.

    # VMEM: double-buffered x, out and pe blocks + headroom for temporaries.
    block_bytes = tile_s * row_bytes
    pe_block_bytes = tile_s * D * 4
    vmem_need = 2 * (2 * block_bytes + pe_block_bytes)
    vmem_limit = int(min(max(vmem_need + (4 << 20), 8 << 20), 32 << 20))

    out2 = pl.pallas_call(
        _pe_add_kernel,
        out_shape=jax.ShapeDtypeStruct((S, B * D), x.dtype),
        grid_spec=pltpu.PrefetchScalarGridSpec(
            num_scalar_prefetch=0,
            grid=grid,
            in_specs=[
                pl.BlockSpec((tile_s, B * D), lambda i: (i, 0)),   # x (lane-dense)
                pl.BlockSpec((tile_s, D), lambda i: (i, 0)),       # pe (no batch dim)
            ],
            out_specs=pl.BlockSpec((tile_s, B * D), lambda i: (i, 0)),
        ),
        compiler_params=pltpu.CompilerParams(
            dimension_semantics=("parallel",),
            vmem_limit_bytes=vmem_limit,
        ),
        cost_estimate=pl.CostEstimate(
            flops=S * B * D,
            transcendentals=0,
            bytes_accessed=2 * S * B * D * itemsize + S * D * 4,
        ),
    )(x2, pe_slice)

    return out2.reshape(S, B, D)


if __name__ == "__main__":
    # --- small demo shape, (seq_len, batch, d_model) layout as in the module ---
    seq_len, batch, d_model = 8, 2, 32
    max_len = 64

    key = jax.random.PRNGKey(0)
    x = jax.random.normal(key, (seq_len, batch, d_model), dtype=jnp.float32)
    pe = make_positional_encoding(d_model, max_len=max_len)

    out = positional_encoding_forward(x, pe)
    out = jax.block_until_ready(out)

    ref = x + pe[:seq_len]
    assert out.shape == (seq_len, batch, d_model)
    assert jnp.allclose(out, ref, atol=1e-6), "mismatch vs reference (f32)"

    # --- second check: multi-step parallel grid, partial trailing block, bf16 ---
    S2, B2, D2 = 72, 4, 128
    xb = jax.random.normal(jax.random.PRNGKey(0), (S2, B2, D2), dtype=jnp.bfloat16)
    pe2 = make_positional_encoding(D2, max_len=128)

    out2 = jax.block_until_ready(positional_encoding_forward(xb, pe2))
    ref2 = (xb.astype(jnp.float32) + pe2[:S2]).astype(jnp.bfloat16)
    assert out2.shape == (S2, B2, D2)
    assert jnp.allclose(out2.astype(jnp.float32), ref2.astype(jnp.float32),
                        atol=2e-2), "mismatch vs reference (bf16)"

    print("KERNEL_OK")
</pallas_src>

<mosaic_0001>
module attributes {stable_mosaic.version = 11 : i64} {
  func.func @_pe_add_kernel(%arg0: i32, %arg1: memref<8x64xf32, #tpu.memory_space<vmem>>, %arg2: memref<8x32xf32, #tpu.memory_space<vmem>>, %arg3: memref<8x64xf32, #tpu.memory_space<vmem>>) attributes {dimension_semantics = [#tpu.dimension_semantics<parallel>], iteration_bounds = array<i64: 1>, scalar_prefetch = 0 : i64, scratch_operands = 0 : i64, tpu.core_type = #tpu.core_type<tc>, window_params = [{transform_indices = @transform_0, window_bounds = array<i64: 8, 64>}, {transform_indices = @transform_1, window_bounds = array<i64: 8, 32>}, {transform_indices = @transform_2, window_bounds = array<i64: 8, 64>}]} {
    %c0 = arith.constant 0 : index
    %c0_0 = arith.constant 0 : index
    %0 = vector.load %arg2[%c0, %c0_0] : memref<8x32xf32, #tpu.memory_space<vmem>>, vector<8x32xf32>
    %c0_1 = arith.constant 0 : index
    %c0_2 = arith.constant 0 : index
    %1 = vector.load %arg1[%c0_1, %c0_2] : memref<8x64xf32, #tpu.memory_space<vmem>>, vector<8x32xf32>
    %2 = arith.addf %1, %0 : vector<8x32xf32>
    %c0_3 = arith.constant 0 : index
    %c0_4 = arith.constant 0 : index
    %3 = vector.load %arg3[%c0_3, %c0_4] : memref<8x64xf32, #tpu.memory_space<vmem>>, vector<8x32xf32>
    tpu.vector_store %arg3[%c0_3, %c0_4], %2 {strides = array<i32>} : memref<8x64xf32, #tpu.memory_space<vmem>>, vector<8x32xf32>,
    %c0_5 = arith.constant 0 : index
    %c32 = arith.constant 32 : index
    %4 = vector.load %arg1[%c0_5, %c32] : memref<8x64xf32, #tpu.memory_space<vmem>>, vector<8x32xf32>
    %5 = arith.addf %4, %0 : vector<8x32xf32>
    %c0_6 = arith.constant 0 : index
    %c32_7 = arith.constant 32 : index
    %6 = vector.load %arg3[%c0_6, %c32_7] : memref<8x64xf32, #tpu.memory_space<vmem>>, vector<8x32xf32>
    tpu.vector_store %arg3[%c0_6, %c32_7], %5 {strides = array<i32>} : memref<8x64xf32, #tpu.memory_space<vmem>>, vector<8x32xf32>,
    return
  }
  func.func @transform_0(%arg0: i32) -> (i32, i32) {
    %c0_i32 = arith.constant 0 : i32
    %c0_i32_0 = arith.constant 0 : i32
    return %arg0, %c0_i32 : i32, i32
  }
  func.func @transform_1(%arg0: i32) -> (i32, i32) {
    %c0_i32 = arith.constant 0 : i32
    %c0_i32_0 = arith.constant 0 : i32
    return %arg0, %c0_i32 : i32, i32
  }
  func.func @transform_2(%arg0: i32) -> (i32, i32) {
    %c0_i32 = arith.constant 0 : i32
    %c0_i32_0 = arith.constant 0 : i32
    return %arg0, %c0_i32 : i32, i32
  }
}

</mosaic_0001>

<bundles_post_ra>
// kernel: tpu_custom_call.1
= control target key start
LH: loop header
LB: loop body
LE: loop exit
PB: predicated region body
PF: predicated region fallthrough
CT: control target
= control target key end

     0   :  { %7 = vsyncpa [#allocation3], 0  ;;  %s181_s0 = inlined_call_operand.hbm [shape: f32[8,64], index: 0, kind: input, shape index: {}]   ;;  %s182_s1 = inlined_call_operand.hbm [shape: f32[8,32], index: 1, kind: input, shape index: {}]   ;;  %s183_s2 = inlined_call_operand.hbm [shape: f32[8,64], index: 2, kind: output, shape index: {}]  }
   0x1   :  { %8 = vsyncpa [#allocation6], 0 }
   0x2   :  { %9 = vsyncpa [#allocation4], 0  ;;  %s15_s11 = sshll.u32 %s181_s0, 4  ;;  %s153_s12 = smov [#allocation2]   ;;  %s16_s11 = int_to_ptr.hbm [resolvable:$true] %s15_s11 }
   0x3   :  { %s17_s13 = sshll.u32 %s153_s12, 4  ;;  %s26_s16 = sshll.u32 %s182_s1, 4  ;;  %s18_s13 = int_to_ptr.vmem [resolvable:$true] %s17_s13  ;;  %s27_s16 = int_to_ptr.hbm [resolvable:$true] %s26_s16 }
   0x4   :  { %20 = dma.hbm_to_vmem [thread:$0]  %s16_s11, 128, %s18_s13, [#allocation3]  }
   0x5   :  { %s154_s17 = smov [#allocation5]  }
   0x6   :  { %s28_s18 = sshll.u32 %s154_s17, 4  ;;  %s29_s18 = int_to_ptr.vmem [resolvable:$true] %s28_s18 }
   0x7   :  { %31 = dma.hbm_to_vmem [thread:$0]  %s27_s16, 128, %s29_s18, [#allocation6]  }
   0x8   :  { %147 = dma.done.wait [#allocation3], 128  }
   0x9   :  { %148 = vsyncadd [#allocation3], 4294967168 }
   0xa   :  { %149 = dma.done.wait [#allocation6], 128  }
   0xb   :  { %150 = vsyncadd [#allocation6], 4294967168  ;;  %v40_v0 = vld [vmem:[#allocation5] sm:$0xff]  ;;  %v41_v1 = vld [vmem:[#allocation2] sm:$0xff]  ;;  %vm43_vm0 = vcmask 261120   ;;  %s155_s0 = smov 32  }
   0xc   :  { %v42_v2 = vadd.f32 %v41_v1, %v40_v0  ;;  %47 = vrot.lane.b32.xlu0 %v40_v0, %s155_s0  ;;  %s156_s19 = smov [#allocation7]   ;;  %s60_s22 = sshll.u32 %s183_s2, 4  ;;  %vm51_vm1 = vcmask 523520   ;;  %s61_s22 = int_to_ptr.hbm [resolvable:$true] %s60_s22 }
   0xd   :  { %s58_s20 = sshll.u32 %s156_s19, 4  ;;  %s59_s20 = int_to_ptr.vmem [resolvable:$true] %s58_s20 }
   0xe   :  { %44 = vst.msk [vmem:[#allocation7] sm:$0xff] %vm43_vm0, %v42_v2 }
  0x7e   :  { %v48_v3 = vpop.permute.xlu0 %47 }
  0x7f   :  { %v50_v4 = vadd.f32 %v48_v3, %v41_v1 }
  0x81   :  { %52 = vst.msk [vmem:[#allocation7] sm:$0xff] %vm51_vm1, %v50_v4 }
  0x82   :  { %63 = dma.vmem_to_hbm [thread:$0]  %s59_s20, 128, %s61_s22, [#allocation4]  }
  0x83   :  { %151 = dma.done.wait [#allocation4], 128  }
  0x84   :  { %152 = vsyncadd [#allocation4], 4294967168 }
  0x85   :  { %68 = vsyncpa [#allocation3], 1 }
  0x86   :  { %69 = vsyncpa [#allocation6], 1 }
  0x87   :  { %70 = vsyncpa [#allocation4], 1 }

</bundles_post_ra>
